<compile_context>
chip_gen: v7x
topology: tpu7x:2x2x1
jax: 0.10.0
libtpu: 0.0.40
codegen_flags: <defaults>
</compile_context>

<pallas_src>
import functools

import jax
import jax.numpy as jnp
from jax.experimental import pallas as pl
from jax.experimental.pallas import tpu as pltpu


def _dino_loss_kernel(teacher_ref, student_ref, center_ref, out_ref,
                      q_ref, acc_ref, *,
                      crops_per_step, total_steps, batch,
                      student_temp, teacher_temp, n_loss_terms):
    step = pl.program_id(0)

    @pl.when(step == 0)
    def _init():
        # Teacher softmax computed exactly once for the whole kernel; the
        # teacher block is VMEM-resident (constant index_map) and q is cached
        # in VMEM scratch for reuse by every student crop.
        t = (teacher_ref[...].astype(jnp.float32)
             - center_ref[...].astype(jnp.float32)) * (1.0 / teacher_temp)
        t = t - jnp.max(t, axis=-1, keepdims=True)
        et = jnp.exp(t)
        q_ref[...] = et * pl.reciprocal(
            jnp.sum(et, axis=-1, keepdims=True), approx=False)
        acc_ref[...] = jnp.zeros_like(acc_ref)

    # Teacher weights (hoisted out of the unrolled crop loop).
    q0 = q_ref[pl.ds(0, batch), :]
    q1 = q_ref[pl.ds(batch, batch), :]
    q_sum = q0 + q1

    inv_stemp = 1.0 / student_temp
    # Static (fully unrolled) loop over the crops in this block: each student
    # crop is read from HBM and log-softmaxed exactly once over the whole run.
    for j in range(crops_per_step):
        s = (student_ref[pl.ds(j * batch, batch), :].astype(jnp.float32)
             * inv_stemp)
        s = s - jnp.max(s, axis=-1, keepdims=True)
        logz = jnp.log(jnp.sum(jnp.exp(s), axis=-1, keepdims=True))
        logp = s - logz

        # Effective teacher weight for this crop: q0 + q1, minus q_v for the
        # diagonal (v == iq) terms that the reference loop skips.
        if total_steps == 1:
            # Single-step grid: the global crop index is static -> pick the
            # weight at trace time (no masking work at runtime).
            w = q1 if j == 0 else (q0 if j == 1 else q_sum)
        else:
            v = step * crops_per_step + j          # global crop index (scalar)
            w = (q_sum
                 - q0 * (v == 0).astype(jnp.float32)
                 - q1 * (v == 1).astype(jnp.float32))

        # Pure-VPU elementwise accumulate into VMEM; no per-crop scalar reduce.
        acc_ref[...] += -w * logp

    @pl.when(step == pl.num_programs(0) - 1)
    def _finalize():
        # Single vector->scalar reduce for the whole kernel; written once.
        out_ref[0, 0] = jnp.sum(acc_ref[...]) / (batch * n_loss_terms)


def _pick_crops_per_step(ncrops, batch, dim, itemsize):
    """Largest divisor of ncrops whose (double-buffered) student block keeps the
    kernel well inside the default scoped-VMEM budget; collapses the grid to a
    single step at small shapes."""
    if batch % 8 != 0:
        # A partial student block would violate the (8, 128) block-shape rule;
        # fall back to one full-array block (always legal).
        return ncrops
    fixed = (2 * batch * dim * itemsize * 2     # resident teacher block
             + dim * 4 * 2                      # resident center
             + 2 * batch * dim * 4              # cached teacher softmax scratch
             + batch * dim * 4)                 # (B, D) loss accumulator
    budget = 10 * 1024 * 1024
    best = 1                                    # TODO(synk): if even c=1 does
    for c in range(1, ncrops + 1):              # not fit, D-tiling is needed.
        if ncrops % c:
            continue
        student = c * batch * dim * itemsize * 2   # double-buffered input block
        if fixed + student <= budget:
            best = c
    return best


def dino_loss(student_output, teacher_output, center, *, ncrops,
              student_temp, teacher_temp, crops_per_step=None):
    n_teacher = 2
    total_s, D = student_output.shape
    total_t, Dt = teacher_output.shape
    assert D == Dt and total_s % ncrops == 0
    B = total_s // ncrops
    assert total_t == n_teacher * B

    if crops_per_step is None:
        crops_per_step = _pick_crops_per_step(
            ncrops, B, D, jnp.dtype(student_output.dtype).itemsize)
    assert ncrops % crops_per_step == 0
    total_steps = ncrops // crops_per_step
    n_loss_terms = float(n_teacher * (ncrops - 1))

    kernel = functools.partial(
        _dino_loss_kernel,
        crops_per_step=crops_per_step,
        total_steps=total_steps,
        batch=B,
        student_temp=student_temp,
        teacher_temp=teacher_temp,
        n_loss_terms=n_loss_terms,
    )

    loss = pl.pallas_call(
        kernel,
        out_shape=jax.ShapeDtypeStruct((1, 1), jnp.float32),
        grid_spec=pltpu.PrefetchScalarGridSpec(
            num_scalar_prefetch=0,
            grid=(total_steps,),
            in_specs=[
                # Teacher block: constant index -> fetched once, VMEM-resident.
                pl.BlockSpec((n_teacher * B, D), lambda i: (0, 0)),
                # Student: one block of crops_per_step crops per grid step.
                pl.BlockSpec((crops_per_step * B, D), lambda i: (i, 0)),
                # Center: constant index -> VMEM-resident.
                pl.BlockSpec((1, D), lambda i: (0, 0)),
            ],
            out_specs=pl.BlockSpec(memory_space=pltpu.SMEM),
            scratch_shapes=[
                pltpu.VMEM((n_teacher * B, D), jnp.float32),  # cached teacher q
                pltpu.VMEM((B, D), jnp.float32),              # loss accumulator
            ],
        ),
        compiler_params=pltpu.CompilerParams(
            # Accumulator and cached teacher softmax are carried across steps.
            dimension_semantics=("arbitrary",)),
    )(teacher_output, student_output, center)
    return loss[0, 0]


class CTCLossPallas:
    """JAX/Pallas port of the PyTorch CTCLoss (DINO loss) module (forward)."""

    def __init__(self, out_dim, ncrops=10, teacher_temp=0.04, student_temp=0.1,
                 center_momentum=0.9):
        self.out_dim = out_dim
        self.ncrops = ncrops
        self.teacher_temp = teacher_temp
        self.student_temp = student_temp
        self.center_momentum = center_momentum
        # register_buffer('center', torch.zeros(1, out_dim)) -> deterministic zeros
        self.center = jnp.zeros((1, out_dim), dtype=jnp.float32)

    def __call__(self, student_output, teacher_output):
        # TODO(synk): pallas_call has no VJP here; wrap with jax.custom_vjp if
        # gradients w.r.t. student_output are needed for training.
        loss = dino_loss(student_output, teacher_output, self.center,
                         ncrops=self.ncrops,
                         student_temp=self.student_temp,
                         teacher_temp=self.teacher_temp)
        # NOTE: Python-side buffer mutation mirrors the PyTorch module; under
        # jax.jit/scan, call update_center and thread the returned center
        # functionally instead.
        self.center = self.update_center(teacher_output)
        return loss

    def update_center(self, teacher_output):
        # TODO(synk): torch.distributed.all_reduce / get_world_size has no
        # single-device equivalent; this is the world_size == 1 EMA update in
        # plain JAX (glue, not the hot path).
        batch_center = (jnp.sum(teacher_output, axis=0, keepdims=True)
                        / teacher_output.shape[0])
        return (self.center * self.center_momentum
                + batch_center * (1.0 - self.center_momentum))


def _reference_loss(student_output, teacher_output, center,
                    ncrops, student_temp, teacher_temp):
    """Pure-JAX reference mirroring the PyTorch forward."""
    student_out = student_output / student_temp
    student_chunks = jnp.split(student_out, ncrops, axis=0)
    teacher_out = jax.nn.softmax((teacher_output - center) / teacher_temp, axis=-1)
    teacher_chunks = jnp.split(teacher_out, 2, axis=0)
    total_loss = 0.0
    n_terms = 0
    for iq, q in enumerate(teacher_chunks):
        for v in range(len(student_chunks)):
            if v == iq:
                continue
            logp = jax.nn.log_softmax(student_chunks[v], axis=-1)
            loss = jnp.sum(-q * logp, axis=-1)
            total_loss += jnp.mean(loss)
            n_terms += 1
    return total_loss / n_terms


if __name__ == "__main__":
    out_dim = 128
    ncrops = 10
    B = 8  # per-crop batch size (keeps (8,128)-aligned blocks)

    key = jax.random.PRNGKey(0)
    k1, k2 = jax.random.split(key)
    student_output = jax.random.normal(k1, (ncrops * B, out_dim), dtype=jnp.float32)
    teacher_output = jax.random.normal(k2, (2 * B, out_dim), dtype=jnp.float32)

    module = CTCLossPallas(out_dim, ncrops=ncrops)
    loss = jax.block_until_ready(module(student_output, teacher_output))

    ref = jax.block_until_ready(
        _reference_loss(student_output, teacher_output,
                        jnp.zeros((1, out_dim), jnp.float32),
                        ncrops, module.student_temp, module.teacher_temp))
    assert jnp.allclose(loss, ref, rtol=1e-5, atol=1e-5), (loss, ref)

    # Also exercise the multi-step pipelined path (grid = (5,), 2 crops/step).
    loss_pipelined = jax.block_until_ready(
        dino_loss(student_output, teacher_output,
                  jnp.zeros((1, out_dim), jnp.float32),
                  ncrops=ncrops,
                  student_temp=module.student_temp,
                  teacher_temp=module.teacher_temp,
                  crops_per_step=2))
    assert jnp.allclose(loss_pipelined, ref, rtol=1e-5, atol=1e-5), (loss_pipelined, ref)

    print("KERNEL_OK")
</pallas_src>

<mosaic_0001>
module attributes {stable_mosaic.version = 11 : i64} {
  func.func @_dino_loss_kernel(%arg0: i32, %arg1: memref<16x128xf32, #tpu.memory_space<vmem>>, %arg2: memref<80x128xf32, #tpu.memory_space<vmem>>, %arg3: memref<1x128xf32, #tpu.memory_space<vmem>>, %arg4: memref<1x1xf32, #tpu.memory_space<smem>>, %arg5: memref<16x128xf32, #tpu.memory_space<vmem>>, %arg6: memref<8x128xf32, #tpu.memory_space<vmem>>) attributes {dimension_semantics = [#tpu.dimension_semantics<arbitrary>], iteration_bounds = array<i64: 1>, scalar_prefetch = 0 : i64, scratch_operands = 2 : i64, tpu.core_type = #tpu.core_type<tc>, window_params = [{pipeline_mode = #tpu.pipeline_mode<synchronous>, transform_indices = @transform_0, window_bounds = array<i64: 16, 128>}, {transform_indices = @transform_1, window_bounds = array<i64: 80, 128>}, {pipeline_mode = #tpu.pipeline_mode<synchronous>, transform_indices = @transform_2, window_bounds = array<i64: 1, 128>}, {transform_indices = @transform_3, window_bounds = array<i64: 1, 1>}]} {
    %c0_i32 = arith.constant 0 : i32
    %0 = arith.cmpi eq, %arg0, %c0_i32 : i32
    %1 = arith.extui %0 : i1 to i32
    %c0_i32_0 = arith.constant 0 : i32
    %2 = arith.cmpi ne, %1, %c0_i32_0 : i32
    scf.if %2 {
      %c0_96 = arith.constant 0 : index
      %c0_97 = arith.constant 0 : index
      %199 = vector.load %arg1[%c0_96, %c0_97] : memref<16x128xf32, #tpu.memory_space<vmem>>, vector<16x128xf32>
      %c0_98 = arith.constant 0 : index
      %c0_99 = arith.constant 0 : index
      %200 = vector.load %arg3[%c0_98, %c0_99] : memref<1x128xf32, #tpu.memory_space<vmem>>, vector<1x128xf32>
      %201 = vector.broadcast %200 : vector<1x128xf32> to vector<16x128xf32>
      %202 = arith.subf %199, %201 : vector<16x128xf32>
      %cst_100 = arith.constant 2.500000e+01 : f32
      %203 = vector.broadcast %cst_100 : f32 to vector<16x128xf32>
      %204 = arith.mulf %202, %203 : vector<16x128xf32>
      %cst_101 = arith.constant dense<0xFF800000> : vector<16xf32>
      %205 = vector.multi_reduction <maximumf>, %204, %cst_101 [1] : vector<16x128xf32> to vector<16xf32>
      %206 = vector.shape_cast %205 : vector<16xf32> to vector<16x1xf32>
      %207 = vector.broadcast %206 : vector<16x1xf32> to vector<16x128xf32>
      %208 = arith.subf %204, %207 : vector<16x128xf32>
      %209 = math.exp %208 : vector<16x128xf32>
      %cst_102 = arith.constant dense<0.000000e+00> : vector<16xf32>
      %210 = vector.multi_reduction <add>, %209, %cst_102 [1] : vector<16x128xf32> to vector<16xf32>
      %211 = vector.shape_cast %210 : vector<16xf32> to vector<16x1xf32>
      %212 = tpu.reciprocal %211 : vector<16x1xf32> -> vector<16x1xf32>
      %213 = vector.broadcast %212 : vector<16x1xf32> to vector<16x128xf32>
      %214 = arith.mulf %209, %213 : vector<16x128xf32>
      %c0_103 = arith.constant 0 : index
      %c0_104 = arith.constant 0 : index
      %215 = vector.load %arg5[%c0_103, %c0_104] : memref<16x128xf32, #tpu.memory_space<vmem>>, vector<16x128xf32>
      tpu.vector_store %arg5[%c0_103, %c0_104], %214 {strides = array<i32>} : memref<16x128xf32, #tpu.memory_space<vmem>>, vector<16x128xf32>,
      %cst_105 = arith.constant 0.000000e+00 : f32
      %216 = vector.broadcast %cst_105 : f32 to vector<8x128xf32>
      %c0_106 = arith.constant 0 : index
      %c0_107 = arith.constant 0 : index
      %217 = vector.load %arg6[%c0_106, %c0_107] : memref<8x128xf32, #tpu.memory_space<vmem>>, vector<8x128xf32>
      tpu.vector_store %arg6[%c0_106, %c0_107], %216 {strides = array<i32>} : memref<8x128xf32, #tpu.memory_space<vmem>>, vector<8x128xf32>,
    } else {
    }
    %c0 = arith.constant 0 : index
    %c0_1 = arith.constant 0 : index
    %3 = vector.load %arg5[%c0, %c0_1] : memref<16x128xf32, #tpu.memory_space<vmem>>, vector<8x128xf32>
    %c8 = arith.constant 8 : index
    %c0_2 = arith.constant 0 : index
    %4 = vector.load %arg5[%c8, %c0_2] : memref<16x128xf32, #tpu.memory_space<vmem>>, vector<8x128xf32>
    %5 = arith.addf %3, %4 : vector<8x128xf32>
    %c0_3 = arith.constant 0 : index
    %c0_4 = arith.constant 0 : index
    %6 = vector.load %arg2[%c0_3, %c0_4] : memref<80x128xf32, #tpu.memory_space<vmem>>, vector<8x128xf32>
    %cst = arith.constant 1.000000e+01 : f32
    %7 = vector.broadcast %cst : f32 to vector<8x128xf32>
    %8 = arith.mulf %6, %7 : vector<8x128xf32>
    %cst_5 = arith.constant dense<0xFF800000> : vector<8xf32>
    %9 = vector.multi_reduction <maximumf>, %8, %cst_5 [1] : vector<8x128xf32> to vector<8xf32>
    %10 = vector.shape_cast %9 : vector<8xf32> to vector<8x1xf32>
    %11 = vector.broadcast %10 : vector<8x1xf32> to vector<8x128xf32>
    %12 = arith.subf %8, %11 : vector<8x128xf32>
    %13 = math.exp %12 : vector<8x128xf32>
    %cst_6 = arith.constant dense<0.000000e+00> : vector<8xf32>
    %14 = vector.multi_reduction <add>, %13, %cst_6 [1] : vector<8x128xf32> to vector<8xf32>
    %15 = vector.shape_cast %14 : vector<8xf32> to vector<8x1xf32>
    %16 = math.log %15 : vector<8x1xf32>
    %17 = vector.broadcast %16 : vector<8x1xf32> to vector<8x128xf32>
    %18 = arith.subf %12, %17 : vector<8x128xf32>
    %c0_7 = arith.constant 0 : index
    %c0_8 = arith.constant 0 : index
    %19 = vector.load %arg6[%c0_7, %c0_8] : memref<8x128xf32, #tpu.memory_space<vmem>>, vector<8x128xf32>
    %cst_9 = arith.constant 0.000000e+00 : f32
    %20 = vector.broadcast %cst_9 : f32 to vector<8x128xf32>
    %21 = arith.subf %20, %4 : vector<8x128xf32>
    %22 = arith.mulf %21, %18 : vector<8x128xf32>
    %23 = arith.addf %19, %22 : vector<8x128xf32>
    %c0_10 = arith.constant 0 : index
    %c0_11 = arith.constant 0 : index
    %24 = vector.load %arg6[%c0_10, %c0_11] : memref<8x128xf32, #tpu.memory_space<vmem>>, vector<8x128xf32>
    tpu.vector_store %arg6[%c0_10, %c0_11], %23 {strides = array<i32>} : memref<8x128xf32, #tpu.memory_space<vmem>>, vector<8x128xf32>,
    %c8_12 = arith.constant 8 : index
    %c0_13 = arith.constant 0 : index
    %25 = vector.load %arg2[%c8_12, %c0_13] : memref<80x128xf32, #tpu.memory_space<vmem>>, vector<8x128xf32>
    %cst_14 = arith.constant 1.000000e+01 : f32
    %26 = vector.broadcast %cst_14 : f32 to vector<8x128xf32>
    %27 = arith.mulf %25, %26 : vector<8x128xf32>
    %cst_15 = arith.constant dense<0xFF800000> : vector<8xf32>
    %28 = vector.multi_reduction <maximumf>, %27, %cst_15 [1] : vector<8x128xf32> to vector<8xf32>
    %29 = vector.shape_cast %28 : vector<8xf32> to vector<8x1xf32>
    %30 = vector.broadcast %29 : vector<8x1xf32> to vector<8x128xf32>
    %31 = arith.subf %27, %30 : vector<8x128xf32>
    %32 = math.exp %31 : vector<8x128xf32>
    %cst_16 = arith.constant dense<0.000000e+00> : vector<8xf32>
    %33 = vector.multi_reduction <add>, %32, %cst_16 [1] : vector<8x128xf32> to vector<8xf32>
    %34 = vector.shape_cast %33 : vector<8xf32> to vector<8x1xf32>
    %35 = math.log %34 : vector<8x1xf32>
    %36 = vector.broadcast %35 : vector<8x1xf32> to vector<8x128xf32>
    %37 = arith.subf %31, %36 : vector<8x128xf32>
    %c0_17 = arith.constant 0 : index
    %c0_18 = arith.constant 0 : index
    %38 = vector.load %arg6[%c0_17, %c0_18] : memref<8x128xf32, #tpu.memory_space<vmem>>, vector<8x128xf32>
    %cst_19 = arith.constant 0.000000e+00 : f32
    %39 = vector.broadcast %cst_19 : f32 to vector<8x128xf32>
    %40 = arith.subf %39, %3 : vector<8x128xf32>
    %41 = arith.mulf %40, %37 : vector<8x128xf32>
    %42 = arith.addf %38, %41 : vector<8x128xf32>
    %c0_20 = arith.constant 0 : index
    %c0_21 = arith.constant 0 : index
    %43 = vector.load %arg6[%c0_20, %c0_21] : memref<8x128xf32, #tpu.memory_space<vmem>>, vector<8x128xf32>
    tpu.vector_store %arg6[%c0_20, %c0_21], %42 {strides = array<i32>} : memref<8x128xf32, #tpu.memory_space<vmem>>, vector<8x128xf32>,
    %c16 = arith.constant 16 : index
    %c0_22 = arith.constant 0 : index
    %44 = vector.load %arg2[%c16, %c0_22] : memref<80x128xf32, #tpu.memory_space<vmem>>, vector<8x128xf32>
    %cst_23 = arith.constant 1.000000e+01 : f32
    %45 = vector.broadcast %cst_23 : f32 to vector<8x128xf32>
    %46 = arith.mulf %44, %45 : vector<8x128xf32>
    %cst_24 = arith.constant dense<0xFF800000> : vector<8xf32>
    %47 = vector.multi_reduction <maximumf>, %46, %cst_24 [1] : vector<8x128xf32> to vector<8xf32>
    %48 = vector.shape_cast %47 : vector<8xf32> to vector<8x1xf32>
    %49 = vector.broadcast %48 : vector<8x1xf32> to vector<8x128xf32>
    %50 = arith.subf %46, %49 : vector<8x128xf32>
    %51 = math.exp %50 : vector<8x128xf32>
    %cst_25 = arith.constant dense<0.000000e+00> : vector<8xf32>
    %52 = vector.multi_reduction <add>, %51, %cst_25 [1] : vector<8x128xf32> to vector<8xf32>
    %53 = vector.shape_cast %52 : vector<8xf32> to vector<8x1xf32>
    %54 = math.log %53 : vector<8x1xf32>
    %55 = vector.broadcast %54 : vector<8x1xf32> to vector<8x128xf32>
    %56 = arith.subf %50, %55 : vector<8x128xf32>
    %c0_26 = arith.constant 0 : index
    %c0_27 = arith.constant 0 : index
    %57 = vector.load %arg6[%c0_26, %c0_27] : memref<8x128xf32, #tpu.memory_space<vmem>>, vector<8x128xf32>
    %cst_28 = arith.constant 0.000000e+00 : f32
    %58 = vector.broadcast %cst_28 : f32 to vector<8x128xf32>
    %59 = arith.subf %58, %5 : vector<8x128xf32>
    %60 = arith.mulf %59, %56 : vector<8x128xf32>
    %61 = arith.addf %57, %60 : vector<8x128xf32>
    %c0_29 = arith.constant 0 : index
    %c0_30 = arith.constant 0 : index
    %62 = vector.load %arg6[%c0_29, %c0_30] : memref<8x128xf32, #tpu.memory_space<vmem>>, vector<8x128xf32>
    tpu.vector_store %arg6[%c0_29, %c0_30], %61 {strides = array<i32>} : memref<8x128xf32, #tpu.memory_space<vmem>>, vector<8x128xf32>,
    %c24 = arith.constant 24 : index
    %c0_31 = arith.constant 0 : index
    %63 = vector.load %arg2[%c24, %c0_31] : memref<80x128xf32, #tpu.memory_space<vmem>>, vector<8x128xf32>
    %cst_32 = arith.constant 1.000000e+01 : f32
    %64 = vector.broadcast %cst_32 : f32 to vector<8x128xf32>
    %65 = arith.mulf %63, %64 : vector<8x128xf32>
    %cst_33 = arith.constant dense<0xFF800000> : vector<8xf32>
    %66 = vector.multi_reduction <maximumf>, %65, %cst_33 [1] : vector<8x128xf32> to vector<8xf32>
    %67 = vector.shape_cast %66 : vector<8xf32> to vector<8x1xf32>
    %68 = vector.broadcast %67 : vector<8x1xf32> to vector<8x128xf32>
    %69 = arith.subf %65, %68 : vector<8x128xf32>
    %70 = math.exp %69 : vector<8x128xf32>
    %cst_34 = arith.constant dense<0.000000e+00> : vector<8xf32>
    %71 = vector.multi_reduction <add>, %70, %cst_34 [1] : vector<8x128xf32> to vector<8xf32>
    %72 = vector.shape_cast %71 : vector<8xf32> to vector<8x1xf32>
    %73 = math.log %72 : vector<8x1xf32>
    %74 = vector.broadcast %73 : vector<8x1xf32> to vector<8x128xf32>
    %75 = arith.subf %69, %74 : vector<8x128xf32>
    %c0_35 = arith.constant 0 : index
    %c0_36 = arith.constant 0 : index
    %76 = vector.load %arg6[%c0_35, %c0_36] : memref<8x128xf32, #tpu.memory_space<vmem>>, vector<8x128xf32>
    %cst_37 = arith.constant 0.000000e+00 : f32
    %77 = vector.broadcast %cst_37 : f32 to vector<8x128xf32>
    %78 = arith.subf %77, %5 : vector<8x128xf32>
    %79 = arith.mulf %78, %75 : vector<8x128xf32>
    %80 = arith.addf %76, %79 : vector<8x128xf32>
    %c0_38 = arith.constant 0 : index
    %c0_39 = arith.constant 0 : index
    %81 = vector.load %arg6[%c0_38, %c0_39] : memref<8x128xf32, #tpu.memory_space<vmem>>, vector<8x128xf32>
    tpu.vector_store %arg6[%c0_38, %c0_39], %80 {strides = array<i32>} : memref<8x128xf32, #tpu.memory_space<vmem>>, vector<8x128xf32>,
    %c32 = arith.constant 32 : index
    %c0_40 = arith.constant 0 : index
    %82 = vector.load %arg2[%c32, %c0_40] : memref<80x128xf32, #tpu.memory_space<vmem>>, vector<8x128xf32>
    %cst_41 = arith.constant 1.000000e+01 : f32
    %83 = vector.broadcast %cst_41 : f32 to vector<8x128xf32>
    %84 = arith.mulf %82, %83 : vector<8x128xf32>
    %cst_42 = arith.constant dense<0xFF800000> : vector<8xf32>
    %85 = vector.multi_reduction <maximumf>, %84, %cst_42 [1] : vector<8x128xf32> to vector<8xf32>
    %86 = vector.shape_cast %85 : vector<8xf32> to vector<8x1xf32>
    %87 = vector.broadcast %86 : vector<8x1xf32> to vector<8x128xf32>
    %88 = arith.subf %84, %87 : vector<8x128xf32>
    %89 = math.exp %88 : vector<8x128xf32>
    %cst_43 = arith.constant dense<0.000000e+00> : vector<8xf32>
    %90 = vector.multi_reduction <add>, %89, %cst_43 [1] : vector<8x128xf32> to vector<8xf32>
    %91 = vector.shape_cast %90 : vector<8xf32> to vector<8x1xf32>
    %92 = math.log %91 : vector<8x1xf32>
    %93 = vector.broadcast %92 : vector<8x1xf32> to vector<8x128xf32>
    %94 = arith.subf %88, %93 : vector<8x128xf32>
    %c0_44 = arith.constant 0 : index
    %c0_45 = arith.constant 0 : index
    %95 = vector.load %arg6[%c0_44, %c0_45] : memref<8x128xf32, #tpu.memory_space<vmem>>, vector<8x128xf32>
    %cst_46 = arith.constant 0.000000e+00 : f32
    %96 = vector.broadcast %cst_46 : f32 to vector<8x128xf32>
    %97 = arith.subf %96, %5 : vector<8x128xf32>
    %98 = arith.mulf %97, %94 : vector<8x128xf32>
    %99 = arith.addf %95, %98 : vector<8x128xf32>
    %c0_47 = arith.constant 0 : index
    %c0_48 = arith.constant 0 : index
    %100 = vector.load %arg6[%c0_47, %c0_48] : memref<8x128xf32, #tpu.memory_space<vmem>>, vector<8x128xf32>
    tpu.vector_store %arg6[%c0_47, %c0_48], %99 {strides = array<i32>} : memref<8x128xf32, #tpu.memory_space<vmem>>, vector<8x128xf32>,
    %c40 = arith.constant 40 : index
    %c0_49 = arith.constant 0 : index
    %101 = vector.load %arg2[%c40, %c0_49] : memref<80x128xf32, #tpu.memory_space<vmem>>, vector<8x128xf32>
    %cst_50 = arith.constant 1.000000e+01 : f32
    %102 = vector.broadcast %cst_50 : f32 to vector<8x128xf32>
    %103 = arith.mulf %101, %102 : vector<8x128xf32>
    %cst_51 = arith.constant dense<0xFF800000> : vector<8xf32>
    %104 = vector.multi_reduction <maximumf>, %103, %cst_51 [1] : vector<8x128xf32> to vector<8xf32>
    %105 = vector.shape_cast %104 : vector<8xf32> to vector<8x1xf32>
    %106 = vector.broadcast %105 : vector<8x1xf32> to vector<8x128xf32>
    %107 = arith.subf %103, %106 : vector<8x128xf32>
    %108 = math.exp %107 : vector<8x128xf32>
    %cst_52 = arith.constant dense<0.000000e+00> : vector<8xf32>
    %109 = vector.multi_reduction <add>, %108, %cst_52 [1] : vector<8x128xf32> to vector<8xf32>
    %110 = vector.shape_cast %109 : vector<8xf32> to vector<8x1xf32>
    %111 = math.log %110 : vector<8x1xf32>
    %112 = vector.broadcast %111 : vector<8x1xf32> to vector<8x128xf32>
    %113 = arith.subf %107, %112 : vector<8x128xf32>
    %c0_53 = arith.constant 0 : index
    %c0_54 = arith.constant 0 : index
    %114 = vector.load %arg6[%c0_53, %c0_54] : memref<8x128xf32, #tpu.memory_space<vmem>>, vector<8x128xf32>
    %cst_55 = arith.constant 0.000000e+00 : f32
    %115 = vector.broadcast %cst_55 : f32 to vector<8x128xf32>
    %116 = arith.subf %115, %5 : vector<8x128xf32>
    %117 = arith.mulf %116, %113 : vector<8x128xf32>
    %118 = arith.addf %114, %117 : vector<8x128xf32>
    %c0_56 = arith.constant 0 : index
    %c0_57 = arith.constant 0 : index
    %119 = vector.load %arg6[%c0_56, %c0_57] : memref<8x128xf32, #tpu.memory_space<vmem>>, vector<8x128xf32>
    tpu.vector_store %arg6[%c0_56, %c0_57], %118 {strides = array<i32>} : memref<8x128xf32, #tpu.memory_space<vmem>>, vector<8x128xf32>,
    %c48 = arith.constant 48 : index
    %c0_58 = arith.constant 0 : index
    %120 = vector.load %arg2[%c48, %c0_58] : memref<80x128xf32, #tpu.memory_space<vmem>>, vector<8x128xf32>
    %cst_59 = arith.constant 1.000000e+01 : f32
    %121 = vector.broadcast %cst_59 : f32 to vector<8x128xf32>
    %122 = arith.mulf %120, %121 : vector<8x128xf32>
    %cst_60 = arith.constant dense<0xFF800000> : vector<8xf32>
    %123 = vector.multi_reduction <maximumf>, %122, %cst_60 [1] : vector<8x128xf32> to vector<8xf32>
    %124 = vector.shape_cast %123 : vector<8xf32> to vector<8x1xf32>
    %125 = vector.broadcast %124 : vector<8x1xf32> to vector<8x128xf32>
    %126 = arith.subf %122, %125 : vector<8x128xf32>
    %127 = math.exp %126 : vector<8x128xf32>
    %cst_61 = arith.constant dense<0.000000e+00> : vector<8xf32>
    %128 = vector.multi_reduction <add>, %127, %cst_61 [1] : vector<8x128xf32> to vector<8xf32>
    %129 = vector.shape_cast %128 : vector<8xf32> to vector<8x1xf32>
    %130 = math.log %129 : vector<8x1xf32>
    %131 = vector.broadcast %130 : vector<8x1xf32> to vector<8x128xf32>
    %132 = arith.subf %126, %131 : vector<8x128xf32>
    %c0_62 = arith.constant 0 : index
    %c0_63 = arith.constant 0 : index
    %133 = vector.load %arg6[%c0_62, %c0_63] : memref<8x128xf32, #tpu.memory_space<vmem>>, vector<8x128xf32>
    %cst_64 = arith.constant 0.000000e+00 : f32
    %134 = vector.broadcast %cst_64 : f32 to vector<8x128xf32>
    %135 = arith.subf %134, %5 : vector<8x128xf32>
    %136 = arith.mulf %135, %132 : vector<8x128xf32>
    %137 = arith.addf %133, %136 : vector<8x128xf32>
    %c0_65 = arith.constant 0 : index
    %c0_66 = arith.constant 0 : index
    %138 = vector.load %arg6[%c0_65, %c0_66] : memref<8x128xf32, #tpu.memory_space<vmem>>, vector<8x128xf32>
    tpu.vector_store %arg6[%c0_65, %c0_66], %137 {strides = array<i32>} : memref<8x128xf32, #tpu.memory_space<vmem>>, vector<8x128xf32>,
    %c56 = arith.constant 56 : index
    %c0_67 = arith.constant 0 : index
    %139 = vector.load %arg2[%c56, %c0_67] : memref<80x128xf32, #tpu.memory_space<vmem>>, vector<8x128xf32>
    %cst_68 = arith.constant 1.000000e+01 : f32
    %140 = vector.broadcast %cst_68 : f32 to vector<8x128xf32>
    %141 = arith.mulf %139, %140 : vector<8x128xf32>
    %cst_69 = arith.constant dense<0xFF800000> : vector<8xf32>
    %142 = vector.multi_reduction <maximumf>, %141, %cst_69 [1] : vector<8x128xf32> to vector<8xf32>
    %143 = vector.shape_cast %142 : vector<8xf32> to vector<8x1xf32>
    %144 = vector.broadcast %143 : vector<8x1xf32> to vector<8x128xf32>
    %145 = arith.subf %141, %144 : vector<8x128xf32>
    %146 = math.exp %145 : vector<8x128xf32>
    %cst_70 = arith.constant dense<0.000000e+00> : vector<8xf32>
    %147 = vector.multi_reduction <add>, %146, %cst_70 [1] : vector<8x128xf32> to vector<8xf32>
    %148 = vector.shape_cast %147 : vector<8xf32> to vector<8x1xf32>
    %149 = math.log %148 : vector<8x1xf32>
    %150 = vector.broadcast %149 : vector<8x1xf32> to vector<8x128xf32>
    %151 = arith.subf %145, %150 : vector<8x128xf32>
    %c0_71 = arith.constant 0 : index
    %c0_72 = arith.constant 0 : index
    %152 = vector.load %arg6[%c0_71, %c0_72] : memref<8x128xf32, #tpu.memory_space<vmem>>, vector<8x128xf32>
    %cst_73 = arith.constant 0.000000e+00 : f32
    %153 = vector.broadcast %cst_73 : f32 to vector<8x128xf32>
    %154 = arith.subf %153, %5 : vector<8x128xf32>
    %155 = arith.mulf %154, %151 : vector<8x128xf32>
    %156 = arith.addf %152, %155 : vector<8x128xf32>
    %c0_74 = arith.constant 0 : index
    %c0_75 = arith.constant 0 : index
    %157 = vector.load %arg6[%c0_74, %c0_75] : memref<8x128xf32, #tpu.memory_space<vmem>>, vector<8x128xf32>
    tpu.vector_store %arg6[%c0_74, %c0_75], %156 {strides = array<i32>} : memref<8x128xf32, #tpu.memory_space<vmem>>, vector<8x128xf32>,
    %c64 = arith.constant 64 : index
    %c0_76 = arith.constant 0 : index
    %158 = vector.load %arg2[%c64, %c0_76] : memref<80x128xf32, #tpu.memory_space<vmem>>, vector<8x128xf32>
    %cst_77 = arith.constant 1.000000e+01 : f32
    %159 = vector.broadcast %cst_77 : f32 to vector<8x128xf32>
    %160 = arith.mulf %158, %159 : vector<8x128xf32>
    %cst_78 = arith.constant dense<0xFF800000> : vector<8xf32>
    %161 = vector.multi_reduction <maximumf>, %160, %cst_78 [1] : vector<8x128xf32> to vector<8xf32>
    %162 = vector.shape_cast %161 : vector<8xf32> to vector<8x1xf32>
    %163 = vector.broadcast %162 : vector<8x1xf32> to vector<8x128xf32>
    %164 = arith.subf %160, %163 : vector<8x128xf32>
    %165 = math.exp %164 : vector<8x128xf32>
    %cst_79 = arith.constant dense<0.000000e+00> : vector<8xf32>
    %166 = vector.multi_reduction <add>, %165, %cst_79 [1] : vector<8x128xf32> to vector<8xf32>
    %167 = vector.shape_cast %166 : vector<8xf32> to vector<8x1xf32>
    %168 = math.log %167 : vector<8x1xf32>
    %169 = vector.broadcast %168 : vector<8x1xf32> to vector<8x128xf32>
    %170 = arith.subf %164, %169 : vector<8x128xf32>
    %c0_80 = arith.constant 0 : index
    %c0_81 = arith.constant 0 : index
    %171 = vector.load %arg6[%c0_80, %c0_81] : memref<8x128xf32, #tpu.memory_space<vmem>>, vector<8x128xf32>
    %cst_82 = arith.constant 0.000000e+00 : f32
    %172 = vector.broadcast %cst_82 : f32 to vector<8x128xf32>
    %173 = arith.subf %172, %5 : vector<8x128xf32>
    %174 = arith.mulf %173, %170 : vector<8x128xf32>
    %175 = arith.addf %171, %174 : vector<8x128xf32>
    %c0_83 = arith.constant 0 : index
    %c0_84 = arith.constant 0 : index
    %176 = vector.load %arg6[%c0_83, %c0_84] : memref<8x128xf32, #tpu.memory_space<vmem>>, vector<8x128xf32>
    tpu.vector_store %arg6[%c0_83, %c0_84], %175 {strides = array<i32>} : memref<8x128xf32, #tpu.memory_space<vmem>>, vector<8x128xf32>,
    %c72 = arith.constant 72 : index
    %c0_85 = arith.constant 0 : index
    %177 = vector.load %arg2[%c72, %c0_85] : memref<80x128xf32, #tpu.memory_space<vmem>>, vector<8x128xf32>
    %cst_86 = arith.constant 1.000000e+01 : f32
    %178 = vector.broadcast %cst_86 : f32 to vector<8x128xf32>
    %179 = arith.mulf %177, %178 : vector<8x128xf32>
    %cst_87 = arith.constant dense<0xFF800000> : vector<8xf32>
    %180 = vector.multi_reduction <maximumf>, %179, %cst_87 [1] : vector<8x128xf32> to vector<8xf32>
    %181 = vector.shape_cast %180 : vector<8xf32> to vector<8x1xf32>
    %182 = vector.broadcast %181 : vector<8x1xf32> to vector<8x128xf32>
    %183 = arith.subf %179, %182 : vector<8x128xf32>
    %184 = math.exp %183 : vector<8x128xf32>
    %cst_88 = arith.constant dense<0.000000e+00> : vector<8xf32>
    %185 = vector.multi_reduction <add>, %184, %cst_88 [1] : vector<8x128xf32> to vector<8xf32>
    %186 = vector.shape_cast %185 : vector<8xf32> to vector<8x1xf32>
    %187 = math.log %186 : vector<8x1xf32>
    %188 = vector.broadcast %187 : vector<8x1xf32> to vector<8x128xf32>
    %189 = arith.subf %183, %188 : vector<8x128xf32>
    %c0_89 = arith.constant 0 : index
    %c0_90 = arith.constant 0 : index
    %190 = vector.load %arg6[%c0_89, %c0_90] : memref<8x128xf32, #tpu.memory_space<vmem>>, vector<8x128xf32>
    %cst_91 = arith.constant 0.000000e+00 : f32
    %191 = vector.broadcast %cst_91 : f32 to vector<8x128xf32>
    %192 = arith.subf %191, %5 : vector<8x128xf32>
    %193 = arith.mulf %192, %189 : vector<8x128xf32>
    %194 = arith.addf %190, %193 : vector<8x128xf32>
    %c0_92 = arith.constant 0 : index
    %c0_93 = arith.constant 0 : index
    %195 = vector.load %arg6[%c0_92, %c0_93] : memref<8x128xf32, #tpu.memory_space<vmem>>, vector<8x128xf32>
    tpu.vector_store %arg6[%c0_92, %c0_93], %194 {strides = array<i32>} : memref<8x128xf32, #tpu.memory_space<vmem>>, vector<8x128xf32>,
    %c0_i32_94 = arith.constant 0 : i32
    %196 = arith.cmpi eq, %arg0, %c0_i32_94 : i32
    %197 = arith.extui %196 : i1 to i32
    %c0_i32_95 = arith.constant 0 : i32
    %198 = arith.cmpi ne, %197, %c0_i32_95 : i32
    scf.if %198 {
      %c0_96 = arith.constant 0 : index
      %c0_97 = arith.constant 0 : index
      %199 = vector.load %arg6[%c0_96, %c0_97] : memref<8x128xf32, #tpu.memory_space<vmem>>, vector<8x128xf32>
      %200 = vector.shape_cast %199 : vector<8x128xf32> to vector<1x8x128xf32>
      %cst_98 = arith.constant dense<0.000000e+00> : vector<1xf32>
      %201 = vector.multi_reduction <add>, %200, %cst_98 [1, 2] : vector<1x8x128xf32> to vector<1xf32>
      %202 = vector.shape_cast %201 : vector<1xf32> to vector<1x1x1xf32>
      %203 = vector.extract %202[0, 0, 0] : f32 from vector<1x1x1xf32>
      %cst_99 = arith.constant 1.440000e+02 : f32
      %204 = arith.divf %203, %cst_99 : f32
      %c0_100 = arith.constant 0 : index
      %c0_101 = arith.constant 0 : index
      %205 = memref.load %arg4[%c0_100, %c0_101] : memref<1x1xf32, #tpu.memory_space<smem>>
      memref.store %204, %arg4[%c0_100, %c0_101] : memref<1x1xf32, #tpu.memory_space<smem>>
    } else {
    }
    return
  }
  func.func @transform_0(%arg0: i32) -> (i32, i32) {
    %c0_i32 = arith.constant 0 : i32
    %c0_i32_0 = arith.constant 0 : i32
    %c0_i32_1 = arith.constant 0 : i32
    return %c0_i32, %c0_i32_0 : i32, i32
  }
  func.func @transform_1(%arg0: i32) -> (i32, i32) {
    %c0_i32 = arith.constant 0 : i32
    %c0_i32_0 = arith.constant 0 : i32
    return %arg0, %c0_i32 : i32, i32
  }
  func.func @transform_2(%arg0: i32) -> (i32, i32) {
    %c0_i32 = arith.constant 0 : i32
    %c0_i32_0 = arith.constant 0 : i32
    %c0_i32_1 = arith.constant 0 : i32
    return %c0_i32, %c0_i32_0 : i32, i32
  }
  func.func @transform_3(%arg0: i32) -> (i32, i32) {
    %c0_i32 = arith.constant 0 : i32
    %c0_i32_0 = arith.constant 0 : i32
    %c0_i32_1 = arith.constant 0 : i32
    return %c0_i32, %c0_i32_0 : i32, i32
  }
}

</mosaic_0001>

<bundles_post_ra>
// kernel: tpu_custom_call.1
= control target key start
LH: loop header
LB: loop body
LE: loop exit
PB: predicated region body
PF: predicated region fallthrough
CT: control target
= control target key end

     0   :  { %8 = vsyncpa [#allocation5], 0  ;;  %s500_s0 = inlined_call_operand.hbm [shape: f32[16,128], index: 0, kind: input, shape index: {}]   ;;  %s501_s1 = inlined_call_operand.hbm [shape: f32[80,128], index: 1, kind: input, shape index: {}]   ;;  %s502_s2 = inlined_call_operand.vmem [shape: f32[1,128], index: 2, kind: input, shape index: {}]   ;;  %s503_s3 = inlined_call_operand.hbm [shape: f32[1,1], index: 3, kind: output, shape index: {}]  }
   0x1   :  { %9 = vsyncpa [#allocation8], 0 }
   0x2   :  { %10 = vsyncpa [#allocation6], 0  ;;  %s396_s12 = smov [#allocation4]   ;;  %s336_s16 = scalar_lea.hbm %s500_s0, 256 }
   0x3   :  { %s16_s13 = sshll.u32 %s396_s12, 4  ;;  %p337_p0 = scmp.ne.s32.totalorder %s500_s0, %s336_s16  ;;  %s17_s13 = int_to_ptr.vmem [resolvable:$true] %s16_s13 }
   0x4   :  { %p340_p1 = scmp.lt.u32.totalorder %s336_s16, %s500_s0 }
   0x6   :  { %p342_p2 = pnand %p340_p1, %p337_p0 }
   0x8   :  { %345 = shalt.err (!%p342_p2)
}
   0x9   :  { %s346_s21 = scalar_lea.vmem %s17_s13, 256  ;;  %p351_p4 = scmp.lt.s32.totalorder %s17_s13, %s17_s13 }
   0xa   :  { %p347_p3 = scmp.ne.s32.totalorder %s17_s13, %s346_s21  ;;  %p352_p5 = scmp.lt.s32.totalorder %s346_s21, %s346_s21 }
   0xc   :  { %p353_p6 = por %p352_p5, %p351_p4 }
   0xe   :  { %p354_p7 = pnand %p353_p6, %p347_p3 }
  0x10   :  { %357 = shalt.err (!%p354_p7)
}
  0x11   :  { %s397_s22 = smov 128   ;;  %s398_s23 = smov 8  }
  0x12   :  { %22 = dma.hbm_to_vmem [thread:$0]  %s500_s0, 256, %s17_s13, [#allocation5], %s397_s22, %s397_s22, %s398_s23  }
  0x13   :  { %s399_s26 = smov [#allocation7]   ;;  %s358_s30 = scalar_lea.hbm %s501_s1, 1280 }
  0x14   :  { %s28_s27 = sshll.u32 %s399_s26, 4  ;;  %p359_p8 = scmp.ne.s32.totalorder %s501_s1, %s358_s30  ;;  %s29_s27 = int_to_ptr.vmem [resolvable:$true] %s28_s27 }
  0x15   :  { %p362_p9 = scmp.lt.u32.totalorder %s358_s30, %s501_s1 }
  0x17   :  { %p364_p10 = pnand %p362_p9, %p359_p8 }
  0x19   :  { %367 = shalt.err (!%p364_p10)
}
  0x1a   :  { %s368_s8 = scalar_lea.vmem %s29_s27, 1280  ;;  %p373_p12 = scmp.lt.s32.totalorder %s29_s27, %s29_s27 }
  0x1b   :  { %p369_p11 = scmp.ne.s32.totalorder %s29_s27, %s368_s8  ;;  %p374_p13 = scmp.lt.s32.totalorder %s368_s8, %s368_s8 }
  0x1d   :  { %p375_p0 = por %p374_p13, %p373_p12 }
  0x1f   :  { %p376_p1 = pnand %p375_p0, %p369_p11 }
  0x21   :  { %379 = shalt.err (!%p376_p1)
}
  0x22   :  { %34 = dma.hbm_to_vmem [thread:$0]  %s501_s1, 1280, %s29_s27, [#allocation8], %s397_s22, %s397_s22, %s398_s23  }
  0x23   :  { %390 = dma.done.wait [#allocation5], 256  }
  0x24   :  { %391 = vsyncadd [#allocation5], 4294967040 }
  0x25   :  { %392 = dma.done.wait [#allocation8], 1280  }
  0x26   :  { %393 = vsyncadd [#allocation8], 4294966016  ;;  %v84_v0 = vld [vmem:[#allocation7] sm:$0xff]  ;;  %v47_v1 = vld [vmem:[#allocation4] sm:$0xff]  ;;  %s380_s14 = scalar_lea.hbm %s503_s3, 16 }
  0x27   :  { %v280_v2 = vld [vmem:[%s502_s2] ss:$0 sm:$0xff]  ;;  %v85_v3 = vmul.f32 10.0, %v84_v0  ;;  %v101_v5 = vld [vmem:[#allocation7 + $0x8] sm:$0xff]  ;;  %v48_v6 = vld [vmem:[#allocation4 + $0x8] sm:$0xff]  ;;  %p381_p2 = scmp.ne.s32.totalorder %s503_s3, %s380_s14  ;;  %p384_p3 = scmp.lt.u32.totalorder %s380_s14, %s503_s3 }
  0x28   :  { %v56_v4 = vsub.f32 %v47_v1, %v280_v2  ;;  %v57_v7 = vsub.f32 %v48_v6, %v280_v2  ;;  %v102_v9 = vmul.f32 10.0, %v101_v5  ;;  %v135_v10 = vld [vmem:[#allocation7 + $0x18] sm:$0xff]  ;;  %v118_v12 = vld [vmem:[#allocation7 + $0x10] sm:$0xff]  ;;  %v167_v14 = vld [vmem:[#allocation7 + $0x28] sm:$0xff] }
  0x29   :  { %86 = vmax.xlane.f32.xlu1 %v85_v3  ;;  %v136_v13 = vmul.f32 10.0, %v135_v10  ;;  %v119_v15 = vmul.f32 10.0, %v118_v12  ;;  %v151_v16 = vld [vmem:[#allocation7 + $0x20] sm:$0xff]  ;;  %v168_v17 = vmul.f32 10.0, %v167_v14  ;;  %v199_v18 = vld [vmem:[#allocation7 + $0x38] sm:$0xff]  ;;  %v183_v20 = vld [vmem:[#allocation7 + $0x30] sm:$0xff]  ;;  %p386_p4 = pnand %p384_p3, %p381_p2 }
  0x2a   :  { %v58_v8 = vmul.f32 25.0, %v56_v4  ;;  %v59_v11 = vmul.f32 25.0, %v57_v7  ;;  %v152_v19 = vmul.f32 10.0, %v151_v16  ;;  %v200_v21 = vmul.f32 10.0, %v199_v18  ;;  %v231_v22 = vld [vmem:[#allocation7 + $0x48] sm:$0xff]  ;;  %v215_v24 = vld [vmem:[#allocation7 + $0x40] sm:$0xff] }
  0x2b   :  { %v184_v23 = vmul.f32 10.0, %v183_v20  ;;  %v232_v25 = vmul.f32 10.0, %v231_v22  ;;  %v216_v26 = vmul.f32 10.0, %v215_v24 }
  0x2c   :  { %60 = vmax.xlane.f32.xlu0 %v58_v8 }
  0x2d   :  { %103 = vmax.xlane.f32.xlu1 %v102_v9 }
  0x30   :  { %62 = vmax.xlane.f32.xlu0 %v59_v11 }
  0x31   :  { %137 = vmax.xlane.f32.xlu1 %v136_v13 }
  0x34   :  { %120 = vmax.xlane.f32.xlu0 %v119_v15 }
  0x35   :  { %169 = vmax.xlane.f32.xlu1 %v168_v17 }
  0x38   :  { %153 = vmax.xlane.f32.xlu0 %v152_v19 }
  0x39   :  { %201 = vmax.xlane.f32.xlu1 %v200_v21 }
  0x3c   :  { %185 = vmax.xlane.f32.xlu0 %v184_v23 }
  0x3d   :  { %233 = vmax.xlane.f32.xlu1 %v232_v25 }
  0x40   :  { %217 = vmax.xlane.f32.xlu0 %v216_v26 }
  0xb6   :  { %v87_v27 = vpop.xlane.xlu1 %86 }
  0xb7   :  { %v448_v28 = vsub.f32 %v85_v3, %v87_v27 }
  0xb9   :  { %v61_v29 = vpop.xlane.xlu0 %60  ;;  %v89_v30 = vmul.f32 1.442695, %v448_v28 }
  0xba   :  { %v64_v31 = vsub.f32 %v58_v8, %v61_v29  ;;  %v104_v32 = vpop.xlane.xlu1 %103 }
  0xbb   :  { %288 = vpow2.f32 %v89_v30  ;;  %v451_v34 = vsub.f32 %v102_v9, %v104_v32 }
  0xbc   :  { %v66_v33 = vmul.f32 1.442695, %v64_v31 }
  0xbd   :  { %v63_v35 = vpop.xlane.xlu0 %62  ;;  %v106_v36 = vmul.f32 1.442695, %v451_v34 }
  0xbe   :  { %v65_v37 = vsub.f32 %v59_v11, %v63_v35  ;;  %290 = vpow2.f32 %v66_v33  ;;  %v138_v38 = vpop.xlane.xlu1 %137 }
  0xbf   :  { %292 = vpow2.f32 %v106_v36  ;;  %v454_v40 = vsub.f32 %v136_v13, %v138_v38 }
  0xc0   :  { %v68_v39 = vmul.f32 1.442695, %v65_v37 }
  0xc1   :  { %v121_v41 = vpop.xlane.xlu0 %120  ;;  %v140_v43 = vmul.f32 1.442695, %v454_v40 }
  0xc2   :  { %v456_v42 = vsub.f32 %v119_v15, %v121_v41  ;;  %v170_v44 = vpop.xlane.xlu1 %169  ;;  %294 = vpow2.f32 %v68_v39 }
  0xc3   :  { %v460_v46 = vsub.f32 %v168_v17, %v170_v44  ;;  %296 = vpow2.f32 %v140_v43 }
  0xc4   :  { %v123_v45 = vmul.f32 1.442695, %v456_v42 }
  0xc5   :  { %v154_v47 = vpop.xlane.xlu0 %153  ;;  %v289_v48 = vpop.eup %288  ;;  %v172_v50 = vmul.f32 1.442695, %v460_v46 }
  0xc6   :  { %298 = vpow2.f32 %v123_v45  ;;  %v462_v49 = vsub.f32 %v152_v19, %v154_v47  ;;  %91 = vadd.xlane.f32.xlu0 %v289_v48  ;;  %v202_v51 = vpop.xlane.xlu1 %201 }
  0xc7   :  { %v466_v53 = vsub.f32 %v200_v21, %v202_v51  ;;  %300 = vpow2.f32 %v172_v50 }
  0xc8   :  { %v156_v52 = vmul.f32 1.442695, %v462_v49  ;;  %v291_v54 = vpop.eup %290 }
  0xc9   :  { %v186_v55 = vpop.xlane.xlu0 %185  ;;  %v293_v56 = vpop.eup %292  ;;  %v204_v58 = vmul.f32 1.442695, %v466_v53 }
  0xca   :  { %302 = vpow2.f32 %v156_v52  ;;  %v468_v57 = vsub.f32 %v184_v23, %v186_v55  ;;  %108 = vadd.xlane.f32.xlu1 %v293_v56  ;;  %70 = vadd.xlane.f32.xlu0 %v291_v54  ;;  %v234_v59 = vpop.xlane.xlu1 %233 }
  0xcb   :  { %v472_v61 = vsub.f32 %v232_v25, %v234_v59  ;;  %304 = vpow2.f32 %v204_v58 }
  0xcc   :  { %v188_v60 = vmul.f32 1.442695, %v468_v57  ;;  %v295_v63 = vpop.eup %294 }
  0xcd   :  { %v218_v62 = vpop.xlane.xlu0 %217  ;;  %v236_v1 = vmul.f32 1.442695, %v472_v61  ;;  %v297_v2 = vpop.eup %296 }
  0xce   :  { %306 = vpow2.f32 %v188_v60  ;;  %v474_v0 = vsub.f32 %v216_v26, %v218_v62  ;;  %72 = vadd.xlane.f32.xlu1 %v295_v63 }
  0xcf   :  { %308 = vpow2.f32 %v236_v1 }
  0xd0   :  { %v299_v3 = vpop.eup %298  ;;  %v220_v4 = vmul.f32 1.442695, %v474_v0 }
  0xd1   :  { %125 = vadd.xlane.f32.xlu0 %v299_v3  ;;  %v301_v5 = vpop.eup %300 }
  0xd2   :  { %310 = vpow2.f32 %v220_v4  ;;  %142 = vadd.xlane.f32.xlu1 %v297_v2 }
  0xd4   :  { %v303_v6 = vpop.eup %302 }
  0xd5   :  { %158 = vadd.xlane.f32.xlu0 %v303_v6  ;;  %v305_v7 = vpop.eup %304 }
  0xd6   :  { %174 = vadd.xlane.f32.xlu1 %v301_v5 }
  0xd8   :  { %v307_v8 = vpop.eup %306 }
  0xd9   :  { %190 = vadd.xlane.f32.xlu0 %v307_v8  ;;  %v309_v9 = vpop.eup %308 }
  0xda   :  { %206 = vadd.xlane.f32.xlu1 %v305_v7 }
  0xdc   :  { %v311_v10 = vpop.eup %310 }
  0xdd   :  { %222 = vadd.xlane.f32.xlu0 %v311_v10 }
  0xde   :  { %238 = vadd.xlane.f32.xlu1 %v309_v9 }
 0x153   :  { %v92_v11 = vpop.xlane.xlu0 %91 }
 0x154   :  { %312 = vlog2.f32 %v92_v11 }
 0x157   :  { %v109_v12 = vpop.xlane.xlu1 %108  ;;  %v71_v13 = vpop.xlane.xlu0 %70 }
 0x158   :  { %314 = vlog2.f32 %v109_v12 }
 0x159   :  { %316 = vrcp.f32 %v71_v13 }
 0x15b   :  { %v73_v14 = vpop.xlane.xlu1 %72 }
 0x15c   :  { %318 = vrcp.f32 %v73_v14 }
 0x15e   :  { %v126_v15 = vpop.xlane.xlu0 %125  ;;  %v313_v17 = vpop.eup %312 }
 0x15f   :  { %320 = vlog2.f32 %v126_v15  ;;  %v143_v16 = vpop.xlane.xlu1 %142  ;;  %v94_v24 = vmul.f32 0.6931472, %v313_v17 }
 0x160   :  { %322 = vlog2.f32 %v143_v16 }
 0x161   :  { %v95_v33 = vsub.f32 %v448_v28, %v94_v24 }
 0x162   :  { %v159_v18 = vpop.xlane.xlu0 %158  ;;  %v315_v19 = vpop.eup %314 }
 0x163   :  { %324 = vlog2.f32 %v159_v18  ;;  %v317_v20 = vpop.eup %316  ;;  %v111_v21 = vmul.f32 0.6931472, %v315_v19  ;;  %v175_v22 = vpop.xlane.xlu1 %174 }
 0x164   :  { %v76_v23 = vmul.f32 %v317_v20, %v291_v54  ;;  %326 = vlog2.f32 %v175_v22 }
 0x165   :  { %v112_v27 = vsub.f32 %v451_v34, %v111_v21 }
 0x166   :  { %v191_v25 = vpop.xlane.xlu0 %190  ;;  %v319_v26 = vpop.eup %318  ;;  %v114_v29 = vsub.f32 0.0, %v76_v23 }
 0x167   :  { %328 = vlog2.f32 %v191_v25  ;;  %v77_v30 = vmul.f32 %v319_v26, %v295_v63  ;;  %v207_v31 = vpop.xlane.xlu1 %206 }
 0x168   :  { %330 = vlog2.f32 %v207_v31  ;;  %v115_v41 = vmul.f32 %v114_v29, %v112_v27 }
 0x169   :  { %v321_v32 = vpop.eup %320  ;;  %v83_v35 = vadd.f32 %v77_v30, %v76_v23  ;;  %v97_v36 = vsub.f32 0.0, %v77_v30 }
 0x16a   :  { %v128_v37 = vmul.f32 0.6931472, %v321_v32  ;;  %v223_v38 = vpop.xlane.xlu0 %222  ;;  %v323_v39 = vpop.eup %322 }
 0x16b   :  { %332 = vlog2.f32 %v223_v38  ;;  %v131_v43 = vsub.f32 0.0, %v83_v35  ;;  %v98_v44 = vmul.f32 %v97_v36, %v95_v33  ;;  %v145_v34 = vmul.f32 0.6931472, %v323_v39  ;;  %v239_v47 = vpop.xlane.xlu1 %238 }
 0x16c   :  { %v129_v45 = vsub.f32 %v456_v42, %v128_v37  ;;  %334 = vlog2.f32 %v239_v47 }
 0x16d   :  { %v325_v48 = vpop.eup %324  ;;  %v116_v50 = vadd.f32 %v115_v41, %v98_v44  ;;  %v146_v52 = vsub.f32 %v454_v40, %v145_v34 }
 0x16e   :  { %v132_v51 = vmul.f32 %v131_v43, %v129_v45  ;;  %v161_v28 = vmul.f32 0.6931472, %v325_v48  ;;  %v327_v54 = vpop.eup %326 }
 0x16f   :  { %v148_v56 = vmul.f32 %v146_v52, %v131_v43  ;;  %v177_v59 = vmul.f32 0.6931472, %v327_v54 }
 0x170   :  { %v133_v55 = vadd.f32 %v132_v51, %v116_v50  ;;  %v162_v58 = vsub.f32 %v462_v49, %v161_v28 }
 0x171   :  { %v329_v60 = vpop.eup %328  ;;  %v178_v42 = vsub.f32 %v460_v46, %v177_v59 }
 0x172   :  { %v149_v62 = vadd.f32 %v148_v56, %v133_v55  ;;  %v164_v63 = vmul.f32 %v162_v58, %v131_v43  ;;  %v193_v1 = vmul.f32 0.6931472, %v329_v60  ;;  %v331_v2 = vpop.eup %330 }
 0x173   :  { %v180_v4 = vmul.f32 %v178_v42, %v131_v43  ;;  %v209_v6 = vmul.f32 0.6931472, %v331_v2 }
 0x174   :  { %v165_v3 = vadd.f32 %v164_v63, %v149_v62  ;;  %v194_v5 = vsub.f32 %v468_v57, %v193_v1 }
 0x175   :  { %v333_v40 = vpop.eup %332  ;;  %v210_v9 = vsub.f32 %v466_v53, %v209_v6 }
 0x176   :  { %v181_v7 = vadd.f32 %v180_v4, %v165_v3  ;;  %v196_v8 = vmul.f32 %v194_v5, %v131_v43  ;;  %v225_v10 = vmul.f32 0.6931472, %v333_v40  ;;  %v335_v49 = vpop.eup %334 }
 0x177   :  { %v212_v11 = vmul.f32 %v210_v9, %v131_v43  ;;  %v241_v13 = vmul.f32 0.6931472, %v335_v49 }
 0x178   :  { %v226_v12 = vsub.f32 %v474_v0, %v225_v10  ;;  %v197_v14 = vadd.f32 %v196_v8, %v181_v7 }
 0x179   :  { %v242_v46 = vsub.f32 %v472_v61, %v241_v13 }
 0x17a   :  { %v213_v15 = vadd.f32 %v212_v11, %v197_v14  ;;  %v228_v16 = vmul.f32 %v226_v12, %v131_v43 }
 0x17b   :  { %v244_v18 = vmul.f32 %v242_v46, %v131_v43 }
 0x17c   :  { %v229_v17 = vadd.f32 %v228_v16, %v213_v15 }
 0x17e   :  { %v245_v57 = vadd.f32 %v244_v18, %v229_v17 }
 0x180   :  { %251 = vadd.xlane.f32.xlu0 %v245_v57 }
 0x20d   :  { %v252_v19 = vpop.xlane.xlu0 %251 }
 0x20e   :  { %v253_v20 = vrot.slane %v252_v19, 4 }
 0x210   :  { %v254_v21 = vadd.f32 %v253_v20, %v252_v19 }
 0x212   :  { %v255_v22 = vrot.slane %v254_v21, 2 }
 0x214   :  { %v256_v53 = vadd.f32 %v255_v22, %v254_v21 }
 0x216   :  { %v257_v23 = vrot.slane %v256_v53, 1 }
 0x218   :  { %v258_v24 = vadd.f32 %v257_v23, %v256_v53 }
 0x21a   :  { %281 = vpush %v258_v24 }
 0x24b   :  { %s282_s1 = spop %281 }
 0x24c   :  { %s262_s2 = smul.f32 0.0069444445, %s282_s1 }
 0x24e   :  { %264 = sst [smem:[#allocation9]] %s262_s2 }
 0x24f   :  { %389 = shalt.err (!%p386_p4)
}
 0x250   :  { %s400_s19 = smov [#allocation9]  }
 0x251   :  { %272 = dma.smem_to_hbm %s400_s19, 16, %s503_s3, [#allocation6]  }
 0x252   :  { %394 = dma.done.wait [#allocation6], 16  }
 0x253   :  { %395 = vsyncadd [#allocation6], 4294967280 }
 0x254   :  { %276 = sfence }
 0x255   :  { %277 = vsyncpa [#allocation5], 1 }
 0x256   :  { %278 = vsyncpa [#allocation8], 1 }
 0x257   :  { %279 = vsyncpa [#allocation6], 1 }

</bundles_post_ra>
